<compile_context>
chip_gen: v6e
topology: v6e:2x2x1
jax: 0.10.0
libtpu: 0.0.40
codegen_flags: <defaults>
</compile_context>

<pallas_src>
import functools

import jax
import jax.numpy as jnp
from jax import lax
from jax.experimental import pallas as pl
from jax.experimental.pallas import tpu as pltpu


def _qkv_proj_kernel(x_ref, w_ref, o_ref):
    # x_ref: (1, C, tn)   input tile (channels on sublanes, spatial on lanes)
    # w_ref: (3H, C)      fused qkv weights, softmax scale pre-folded into the q rows
    # o_ref: (1, 3H, tn)  bf16 fused q/k/v tile (column layout)
    x_bf = x_ref[0].astype(jnp.bfloat16)          # cast in-kernel: no extra HBM pass over x
    o_ref[0] = jnp.dot(w_ref[...], x_bf,
                       preferred_element_type=jnp.float32).astype(o_ref.dtype)


def _attn_kernel(q_ref, k_ref, v_ref, wo_ref, bo_ref, o_ref, *, heads, dim_head):
    # q_ref:  (1, H, tq)  bf16 scaled q tile (column layout: head-dim on sublanes)
    # k_ref:  (1, H, N)   bf16 keys   (constant block index in q -> fetched once per batch)
    # v_ref:  (1, H, N)   bf16 values
    # wo_ref: (C, H)      bf16 output projection (single lane-dense slab)
    # bo_ref: (C, 1)      f32 output bias
    # o_ref:  (1, C, tq)  lane-dense output tile (unmasked vst over >=128 lanes)

    # (H, tq) -> (tq, H): one in-kernel transpose (XLU slot, idle while MXU-bound);
    # replaces the old wrapper-side (B, N, C) HBM transpose + second input stream.
    q_row = jnp.transpose(q_ref[0].astype(jnp.float32)).astype(jnp.bfloat16)   # (tq, H)

    # TODO(synk): for very large N (>~2k), tile K/V with an online-softmax (flash) loop
    #             so the (tq, N) score tile stays bounded in VMEM (v7x: 64 MiB).
    # TODO(synk): switch to lax.fori_loop(..., unroll=True) + a (tq, H) scratch if heads
    #             grows beyond ~4 (static unroll inflates live ranges / vreg pressure).
    outs = []
    for h in range(heads):                           # static unroll (heads == 4)
        lo, hi = h * dim_head, (h + 1) * dim_head
        qh = q_row[:, lo:hi]                         # (tq, dh) bf16 (lane slice)
        kh = k_ref[0, lo:hi, :]                      # (dh, N)  bf16 (sublane slice)
        vh = v_ref[0, lo:hi, :]                      # (dh, N)  bf16

        sim = jnp.dot(qh, kh, preferred_element_type=jnp.float32)     # (tq, N) f32
        m = jnp.max(sim, axis=-1, keepdims=True)
        p = jnp.exp(sim - m)                                           # (tq, N) f32
        s = jnp.sum(p, axis=-1, keepdims=True)                         # (tq, 1)
        p_bf = p.astype(jnp.bfloat16)                # un-normalized probabilities
        # out_h = p @ v^T (contract over N, trans_b form) -> (tq, dh)
        oh = lax.dot_general(p_bf, vh, (((1,), (1,)), ((), ())),
                             preferred_element_type=jnp.float32)
        # post-PV normalization: a (tq, dh) multiply instead of a (tq, N) one
        outs.append(oh * pl.reciprocal(s, approx=False))

    oh_all = jnp.concatenate(outs, axis=-1).astype(jnp.bfloat16)       # (tq, H)
    # single output projection with K = hidden (was 4 K=32 matmuls inside the head loop)
    y = lax.dot_general(wo_ref[...], oh_all, (((1,), (1,)), ((), ())),
                        preferred_element_type=jnp.float32)            # (C, tq)
    o_ref[0] = (y + bo_ref[...]).astype(o_ref.dtype)


def attention_pallas(x_nchw, w_qkv, w_out, b_out, *, heads=4, dim_head=32,
                     tq=256, tn=512):
    """x_nchw: (B, C, H, W); w_qkv: (3*hidden, C); w_out: (C, hidden); b_out: (C,)."""
    B, C, Hs, Ws = x_nchw.shape
    hidden = heads * dim_head
    N = Hs * Ws
    scale = dim_head ** (-0.5)
    tq = min(tq, N)
    tn = min(tn, N)
    assert N % tq == 0 and N % tn == 0, "spatial size must be divisible by the tiles"

    # Lane-dense channels-first slab: pure reshape of NCHW (no HBM transpose/cast pass).
    x_cn = x_nchw.reshape(B, C, N)

    # bf16 weights in HBM; fold the softmax scale into the q rows of the fused projection.
    w_q = w_qkv[:hidden] * scale
    w_qkv_s = jnp.concatenate([w_q, w_qkv[hidden:]], axis=0).astype(jnp.bfloat16)  # (3H, C)
    w_o = w_out.astype(jnp.bfloat16)                                               # (C, H)
    b_o = b_out.astype(jnp.float32).reshape(C, 1)

    # Kernel 1: fused QKV projection, computed exactly once per spatial position
    # (previously the K/V projection was redundantly recomputed for every q tile).
    qkv = pl.pallas_call(
        _qkv_proj_kernel,
        out_shape=jax.ShapeDtypeStruct((B, 3 * hidden, N), jnp.bfloat16),
        grid_spec=pltpu.PrefetchScalarGridSpec(
            num_scalar_prefetch=0,
            grid=(B, N // tn),
            in_specs=[
                pl.BlockSpec((1, C, tn), lambda b, n: (b, 0, n)),
                pl.BlockSpec((3 * hidden, C), lambda b, n: (0, 0)),
            ],
            out_specs=pl.BlockSpec((1, 3 * hidden, tn), lambda b, n: (b, 0, n)),
        ),
        compiler_params=pltpu.CompilerParams(
            dimension_semantics=("parallel", "parallel")),
    )(x_cn, w_qkv_s)

    # Kernel 2: attention + output projection.
    kernel = functools.partial(_attn_kernel, heads=heads, dim_head=dim_head)
    out_cn = pl.pallas_call(
        kernel,
        out_shape=jax.ShapeDtypeStruct((B, C, N), x_nchw.dtype),
        grid_spec=pltpu.PrefetchScalarGridSpec(
            num_scalar_prefetch=0,
            grid=(B, N // tq),
            in_specs=[
                # Q: streamed per q tile (rows [0, H) of the fused qkv slab).
                pl.BlockSpec((1, hidden, tq), lambda b, q: (b, 0, q)),
                # K, V: constant block index over the q axis -> DMA'd once per batch.
                pl.BlockSpec((1, hidden, N), lambda b, q: (b, 1, 0)),
                pl.BlockSpec((1, hidden, N), lambda b, q: (b, 2, 0)),
                pl.BlockSpec((C, hidden), lambda b, q: (0, 0)),
                pl.BlockSpec((C, 1), lambda b, q: (0, 0)),
            ],
            out_specs=pl.BlockSpec((1, C, tq), lambda b, q: (b, 0, q)),
        ),
        compiler_params=pltpu.CompilerParams(
            # No carried scratch -> both axes stay parallel (v7x megacore splits on batch).
            dimension_semantics=("parallel", "parallel"),
            vmem_limit_bytes=32 * 1024 * 1024),
    )(qkv, qkv, qkv, w_o, b_o)

    # (B, C, N) -> NCHW is a pure reshape (output is already channels-first).
    return out_cn.reshape(B, C, Hs, Ws)


def attention_ref(x_nchw, w_qkv, w_out, b_out, *, heads=4, dim_head=32):
    """Pure-JAX f32 reference mirroring the PyTorch module semantics."""
    B, C, Hs, Ws = x_nchw.shape
    hidden = heads * dim_head
    N = Hs * Ws
    scale = dim_head ** (-0.5)
    x = x_nchw.reshape(B, C, N).astype(jnp.float32)                   # (B, C, N)
    qkv = jnp.einsum('oc,bcn->bon', w_qkv.astype(jnp.float32), x)     # (B, 3*hidden, N)
    q, k, v = jnp.split(qkv, 3, axis=1)
    rs = lambda t: t.reshape(B, heads, dim_head, N)
    q, k, v = rs(q) * scale, rs(k), rs(v)
    sim = jnp.einsum('bhdi,bhdj->bhij', q, k)
    attn = jax.nn.softmax(sim, axis=-1)
    out = jnp.einsum('bhij,bhdj->bhid', attn, v)                      # (B, h, N, d)
    out = jnp.transpose(out, (0, 1, 3, 2)).reshape(B, hidden, Hs, Ws)
    y = jnp.einsum('oc,bchw->bohw', w_out.astype(jnp.float32), out) + b_out.reshape(1, C, 1, 1)
    return y.astype(x_nchw.dtype)


if __name__ == "__main__":
    B, dim, Hs, Ws = 2, 4, 16, 16
    heads, dim_head = 4, 32
    hidden = heads * dim_head

    key = jax.random.PRNGKey(0)
    kx, kqkv, kwo, kbo = jax.random.split(key, 4)
    x = jax.random.normal(kx, (B, dim, Hs, Ws), dtype=jnp.float32)
    # Deterministic synthetic parameters (1x1 conv kernels flattened to 2-D).
    w_qkv = jax.random.normal(kqkv, (hidden * 3, dim), dtype=jnp.float32) * 0.05
    w_out = jax.random.normal(kwo, (dim, hidden), dtype=jnp.float32) * 0.05
    b_out = jax.random.normal(kbo, (dim,), dtype=jnp.float32) * 0.05

    y = attention_pallas(x, w_qkv, w_out, b_out, heads=heads, dim_head=dim_head)
    y = jax.block_until_ready(y)

    y_ref = attention_ref(x, w_qkv, w_out, b_out, heads=heads, dim_head=dim_head)
    # bf16 weights/activations on all MXU matmuls (projections + attention) vs a pure-f32
    # reference -> ~1% relative error budget; softmax math stays f32 with exact reciprocal.
    assert jnp.allclose(y, y_ref, rtol=2e-2, atol=2e-2), "mismatch vs reference"
    print("KERNEL_OK")
</pallas_src>

<mosaic_0001>
module attributes {stable_mosaic.version = 11 : i64} {
  func.func @_qkv_proj_kernel(%arg0: i32, %arg1: i32, %arg2: memref<1x4x256xf32, #tpu.memory_space<vmem>>, %arg3: memref<384x4xbf16, #tpu.memory_space<vmem>>, %arg4: memref<1x384x256xbf16, #tpu.memory_space<vmem>>) attributes {dimension_semantics = [#tpu.dimension_semantics<parallel>, #tpu.dimension_semantics<parallel>], iteration_bounds = array<i64: 2, 1>, scalar_prefetch = 0 : i64, scratch_operands = 0 : i64, tpu.core_type = #tpu.core_type<tc>, window_params = [{transform_indices = @transform_0, window_bounds = array<i64: 1, 4, 256>}, {pipeline_mode = #tpu.pipeline_mode<synchronous>, transform_indices = @transform_1, window_bounds = array<i64: 384, 4>}, {transform_indices = @transform_2, window_bounds = array<i64: 1, 384, 256>}]} {
    %c0 = arith.constant 0 : index
    %c0_0 = arith.constant 0 : index
    %c0_1 = arith.constant 0 : index
    %0 = vector.load %arg2[%c0, %c0_0, %c0_1] : memref<1x4x256xf32, #tpu.memory_space<vmem>>, vector<1x4x256xf32>
    %1 = vector.shape_cast %0 : vector<1x4x256xf32> to vector<4x256xf32>
    %2 = arith.truncf %1 : vector<4x256xf32> to vector<4x256xbf16>
    %c0_2 = arith.constant 0 : index
    %c0_3 = arith.constant 0 : index
    %3 = vector.load %arg3[%c0_2, %c0_3] : memref<384x4xbf16, #tpu.memory_space<vmem>>, vector<384x4xbf16>
    %cst = arith.constant dense<0.000000e+00> : vector<384x256xf32>
    %4 = tpu.matmul %3, %2, %cst {dimension_numbers = #tpu.dot_dimension_numbers<[1], [0], [0], [1], [0, 0, 1, 1], [], []>} : vector<384x4xbf16>, vector<4x256xbf16>, vector<384x256xf32> -> vector<384x256xf32>
    %5 = arith.truncf %4 : vector<384x256xf32> to vector<384x256xbf16>
    %c0_4 = arith.constant 0 : index
    %c0_5 = arith.constant 0 : index
    %c0_6 = arith.constant 0 : index
    %6 = vector.load %arg4[%c0_4, %c0_5, %c0_6] : memref<1x384x256xbf16, #tpu.memory_space<vmem>>, vector<1x384x256xbf16>
    %7 = vector.shape_cast %6 : vector<1x384x256xbf16> to vector<384x256xbf16>
    %8 = vector.shape_cast %5 : vector<384x256xbf16> to vector<1x384x256xbf16>
    tpu.vector_store %arg4[%c0_4, %c0_5, %c0_6], %8 {strides = array<i32>} : memref<1x384x256xbf16, #tpu.memory_space<vmem>>, vector<1x384x256xbf16>,
    return
  }
  func.func @transform_0(%arg0: i32, %arg1: i32) -> (i32, i32, i32) {
    %c0_i32 = arith.constant 0 : i32
    %c0_i32_0 = arith.constant 0 : i32
    return %arg0, %c0_i32, %arg1 : i32, i32, i32
  }
  func.func @transform_1(%arg0: i32, %arg1: i32) -> (i32, i32) {
    %c0_i32 = arith.constant 0 : i32
    %c0_i32_0 = arith.constant 0 : i32
    %c0_i32_1 = arith.constant 0 : i32
    return %c0_i32, %c0_i32_0 : i32, i32
  }
  func.func @transform_2(%arg0: i32, %arg1: i32) -> (i32, i32, i32) {
    %c0_i32 = arith.constant 0 : i32
    %c0_i32_0 = arith.constant 0 : i32
    return %arg0, %c0_i32, %arg1 : i32, i32, i32
  }
}

</mosaic_0001>

<bundles_post_ra>
// kernel: tpu_custom_call.1
= control target key start
LH: loop header
LB: loop body
LE: loop exit
PB: predicated region body
PF: predicated region fallthrough
CT: control target
= control target key end

     0   :  { %7 = vsyncpa [#allocation3], 0  ;;  %s1761_s0 = inlined_call_operand.vmem [shape: f32[2,4,256], index: 0, kind: input, shape index: {}]   ;;  %s1762_s1 = inlined_call_operand.vmem [shape: bf16[384,4], index: 1, kind: input, shape index: {}]   ;;  %s1763_s2 = inlined_call_operand.hbm [shape: bf16[2,384,256], index: 2, kind: output, shape index: {}]  }
   0x1   :  { %9 = vsyncpa [#allocation3 + $0x1], 0  ;;  %s1472_s9 = smov 0   ;;  %s1474_s10 = smov 0  }
   0x2   :  { %s1476_s11 = smov 0   ;;  %s1478_s12 = smov 0  }
   0x3   :  { %s1480_s13 = smov 0   ;;  %s1482_s14 = smov 0  }
   0x4 LB: > { %s1132_s15 = sadd.s32 4294967295, %s1451_s14   ;;  %s1133_s16 = sadd.s32 4294967294, %s1451_s14   ;;  %s1451_s14 = sphi %s1482_s14, %s15_s14   ;;  %s1447_s13 = sphi %s1480_s13, %s1770_s13   ;;  %s1443_s12 = sphi %s1478_s12, %s1769_s12   ;;  %s1439_s11 = sphi %s1476_s11, %s1768_s11   ;;  %s1435_s10 = sphi %s1474_s10, %s1767_s10   ;;  %s1431_s9 = sphi %s1472_s9, %s1766_s9  }
   0x5   : > { %s27_s17 = sadd.s32 1, %s1447_s13  ;;  %s85_s18 = sadd.s32 1, %s1439_s11 }
   0x6   : > { %p29_p0 = scmp.ge.s32.totalorder %s27_s17, 2  ;;  %p95_p1 = scmp.ne.s32.totalorder %s1439_s11, %s1435_s10 }
   0x7   : > { %p96_p2 = scmp.eq.s32.totalorder %s1132_s15, 1  ;;  %p101_p3 = scmp.ne.s32.totalorder %s1435_s10, %s1431_s9 }
   0x8   : > { %s1772_s17 = smov (%p29_p0, %s27_s17), 0  ;;  %p102_p5 = scmp.eq.s32.totalorder %s1133_s16, 1 }
   0x9   : > { %p1512_p4 = por %p96_p2, %p95_p1  ;;  %s80_s20 = ssub.s32 %s1447_s13, %s1772_s17 }
   0xa   : > { %p1136_p6 = scmp.ge.s32.totalorder %s1451_s14, 1  ;;  %p83_p7 = scmp.eq.s32.totalorder %s80_s20, 0 }
   0xb   : > { %p1519_p8 = por %p102_p5, %p101_p3  ;;  %p136_p9 = scmp.lt.s32.totalorder %s1451_s14, 3 }
   0xc   : > { %s1525_s22 = scalar_select %p83_p7, %s1439_s11, %s85_s18  }
   0xd   : > { %p137_p10 = pnand %p1136_p6, %p136_p9 }
   0xe   : > { %p163_p11 = scmp.lt.s32.totalorder (!%p137_p10), %s1443_s12, 1  ;;  %s159_s20 = sand.u32 (!%p137_p10), 1, %s1435_s10  }
   0xf   : > { %140 = sbr.rel (%p137_p10) target bundleno = 336 (0x150), region = 28  ;;  %s1454_s3 = smov (!%p137_p10), [#allocation2]  }
  0x10   : > { %s1291_s25 = smul.u32 (!%p137_p10), 6144, %s1443_s12  ;;  %s1379_s4 = sshll.u32 (!%p137_p10), %s1454_s3, 4  ;;  %s1380_s4 = int_to_ptr.vmem [resolvable:$false] %s1379_s4 }
  0x11   : > { %s1381_s5 = scalar_lea.vmem (!%p137_p10), %s1380_s4, 12288 }
  0x12   : > { %s1708_s29 = scalar_lea.hbm (!%p137_p10), %s1763_s2, %s1291_s25 }
  0x14   : > { %v1453_v0 = vmov 0   ;;  %s164_s23 = scalar_select %p163_p11, %s1443_s12, 1  ;;  %vm421_vm0 = vcmask 1041408   ;;  %v1351_v6 = vld [vmem:[%s1762_s1] sm:$0xff]   ;;  %vm348_vm1 = vcmask 31744   ;;  %v1353_v8 = vld [vmem:[%s1762_s1 + $0x8] sm:$0xff]  }
  0x15   : > { %460 = vmatprep.mubr.bf16.mxu0 %v1453_v0  ;;  %580 = vmatprep.mubr.bf16.mxu1 %v1453_v0  ;;  %v1352_v7 = vld [vmem:[%s1762_s1 + $0x60] sm:$0xff]   ;;  %v1354_v9 = vld [vmem:[%s1762_s1 + $0x68] sm:$0xff]   ;;  %v1355_v10 = vld [vmem:[%s1762_s1 + $0x10] sm:$0xff]   ;;  %s1716_s12 = scalar_lea.sflag [#allocation3], %s159_s20 }
  0x16   : > { %s1239_s24 = sshll.u32 %s164_s23, 3  ;;  %v1356_v11 = vld [vmem:[%s1762_s1 + $0x70] sm:$0xff]   ;;  %v1357_v12 = vld [vmem:[%s1762_s1 + $0x18] sm:$0xff]   ;;  %v1359_v14 = vld [vmem:[%s1762_s1 + $0x20] sm:$0xff]   ;;  %s1290_s23 = smul.u32 384, %s159_s20 }
  0x17   : > { %s170_s27 = scalar_lea.vmem %s1761_s0, %s1239_s24  ;;  %v1358_v13 = vld [vmem:[%s1762_s1 + $0x78] sm:$0xff]   ;;  %v1360_v15 = vld [vmem:[%s1762_s1 + $0x80] sm:$0xff]   ;;  %v1361_v16 = vld [vmem:[%s1762_s1 + $0x28] sm:$0xff]  }
  0x18   : > { %v174_v1 = vld [vmem:[%s170_s27] sm:$0xff]  ;;  %v1362_v17 = vld [vmem:[%s1762_s1 + $0x88] sm:$0xff]   ;;  %v1363_v18 = vld [vmem:[%s1762_s1 + $0x30] sm:$0xff]   ;;  %s1655_s24 = scalar_lea.vmem [#allocation2], %s1290_s23 }
  0x19   : > { %v176_v2 = vcombine.high %v174_v1, %v174_v1  ;;  %v178_v3 = vpack.c.bf16 %v174_v1, %v174_v1  ;;  %v1364_v19 = vld [vmem:[%s1762_s1 + $0x90] sm:$0xff]   ;;  %v1365_v20 = vld [vmem:[%s1762_s1 + $0x38] sm:$0xff]   ;;  %v1367_v22 = vld [vmem:[%s1762_s1 + $0x40] sm:$0xff]   ;;  %s1053_s26 = sshll.u32 %s1655_s24, 4  ;;  %s1710_s26 = int_to_ptr.vmem [resolvable:$true] %s1053_s26 }
  0x1a   : > { %v1366_v21 = vld [vmem:[%s1762_s1 + $0x98] sm:$0xff]   ;;  %v1368_v23 = vld [vmem:[%s1762_s1 + $0xa0] sm:$0xff]   ;;  %v1369_v24 = vld [vmem:[%s1762_s1 + $0x48] sm:$0xff]   ;;  %s1375_s30 = scalar_lea.vmem %s1710_s26, 6144  ;;  %p1382_p1 = scmp.lt.s32.totalorder %s1710_s26, %s1380_s4 }
  0x1b   : > { %v179_v4 = vpack.c.bf16 %v176_v2, %v176_v2  ;;  %v423_v5 = vsel %vm421_vm0, %v178_v3, 0  ;;  %v1370_v25 = vld [vmem:[%s1762_s1 + $0xa8] sm:$0xff]   ;;  %v1371_v26 = vld [vmem:[%s1762_s1 + $0x50] sm:$0xff]   ;;  %v1373_v28 = vld [vmem:[%s1762_s1 + $0x58] sm:$0xff]   ;;  %p1376_p12 = scmp.ne.s32.totalorder %s1710_s26, %s1375_s30  ;;  %p1383_p2 = scmp.lt.s32.totalorder %s1381_s5, %s1375_s30 }
  0x1c   : > { %v1372_v27 = vld [vmem:[%s1762_s1 + $0xb0] sm:$0xff]   ;;  %v1374_v29 = vld [vmem:[%s1762_s1 + $0xb8] sm:$0xff]  }
  0x1d   : > { %1163 = vmatprep.subr.msk.bf16.mxu0 %vm421_vm0, %v179_v4  ;;  %1288 = vmatprep.subr.msk.bf16.mxu1 %vm421_vm0, %v179_v4  ;;  %p1377_p13 = pnand %p1376_p12, %p1512_p4  ;;  %p1384_p3 = por %p1383_p2, %p1382_p1 }
  0x1e   : > { %443 = vmatpush1.bf16.msra.mxu0 %v423_v5  ;;  %1289 = vmatpush1.bf16.msra.mxu1 %v423_v5 }
  0x1f   : > { %p1378_p0 = pneg %p1377_p13 }
  0x21   : > { %1164 = vmatmul.mubr.msk.bf16.vlgmr.msra.gmra.mxu0 %vm348_vm1, %v1351_v6  ;;  %1176 = vmatmul.mubr.msk.bf16.vlgmr.msra.gmra.mxu1 %vm348_vm1, %v1352_v7  ;;  %p1385_p5 = pnand %p1384_p3, %p1378_p0 }
  0x22   : > { %470 = vmatprep.mubr.bf16.mxu0 %v1453_v0  ;;  %590 = vmatprep.mubr.bf16.mxu1 %v1453_v0 }
  0x29   : > { %1165 = vmatmul.mubr.msk.bf16.gmra.mxu0 %vm348_vm1, %v1353_v8  ;;  %1177 = vmatmul.mubr.msk.bf16.gmra.mxu1 %vm348_vm1, %v1354_v9 }
  0x2a   : > { %480 = vmatprep.mubr.bf16.mxu0 %v1453_v0  ;;  %600 = vmatprep.mubr.bf16.mxu1 %v1453_v0 }
  0x31   : > { %1166 = vmatmul.mubr.msk.bf16.gmra.mxu0 %vm348_vm1, %v1355_v10  ;;  %1178 = vmatmul.mubr.msk.bf16.gmra.mxu1 %vm348_vm1, %v1356_v11 }
  0x32   : > { %490 = vmatprep.mubr.bf16.mxu0 %v1453_v0  ;;  %610 = vmatprep.mubr.bf16.mxu1 %v1453_v0 }
  0x39   : > { %1167 = vmatmul.mubr.msk.bf16.gmra.mxu0 %vm348_vm1, %v1357_v12  ;;  %1179 = vmatmul.mubr.msk.bf16.gmra.mxu1 %vm348_vm1, %v1358_v13 }
  0x3a   : > { %500 = vmatprep.mubr.bf16.mxu0 %v1453_v0  ;;  %620 = vmatprep.mubr.bf16.mxu1 %v1453_v0 }
  0x41   : > { %1168 = vmatmul.mubr.msk.bf16.gmra.mxu0 %vm348_vm1, %v1359_v14  ;;  %1180 = vmatmul.mubr.msk.bf16.gmra.mxu1 %vm348_vm1, %v1360_v15 }
  0x42   : > { %510 = vmatprep.mubr.bf16.mxu0 %v1453_v0  ;;  %630 = vmatprep.mubr.bf16.mxu1 %v1453_v0 }
  0x49   : > { %1169 = vmatmul.mubr.msk.bf16.gmra.mxu0 %vm348_vm1, %v1361_v16  ;;  %1181 = vmatmul.mubr.msk.bf16.gmra.mxu1 %vm348_vm1, %v1362_v17 }
  0x4a   : > { %520 = vmatprep.mubr.bf16.mxu0 %v1453_v0  ;;  %640 = vmatprep.mubr.bf16.mxu1 %v1453_v0 }
  0x51   : > { %1170 = vmatmul.mubr.msk.bf16.gmra.mxu0 %vm348_vm1, %v1363_v18  ;;  %1182 = vmatmul.mubr.msk.bf16.gmra.mxu1 %vm348_vm1, %v1364_v19 }
  0x52   : > { %530 = vmatprep.mubr.bf16.mxu0 %v1453_v0  ;;  %650 = vmatprep.mubr.bf16.mxu1 %v1453_v0 }
  0x59   : > { %1171 = vmatmul.mubr.msk.bf16.gmra.mxu0 %vm348_vm1, %v1365_v20  ;;  %1183 = vmatmul.mubr.msk.bf16.gmra.mxu1 %vm348_vm1, %v1366_v21 }
  0x5a   : > { %540 = vmatprep.mubr.bf16.mxu0 %v1453_v0  ;;  %660 = vmatprep.mubr.bf16.mxu1 %v1453_v0 }
  0x61   : > { %1172 = vmatmul.mubr.msk.bf16.gmra.mxu0 %vm348_vm1, %v1367_v22  ;;  %1184 = vmatmul.mubr.msk.bf16.gmra.mxu1 %vm348_vm1, %v1368_v23 }
  0x62   : > { %550 = vmatprep.mubr.bf16.mxu0 %v1453_v0  ;;  %670 = vmatprep.mubr.bf16.mxu1 %v1453_v0 }
  0x69   : > { %1173 = vmatmul.mubr.msk.bf16.gmra.mxu0 %vm348_vm1, %v1369_v24  ;;  %1185 = vmatmul.mubr.msk.bf16.gmra.mxu1 %vm348_vm1, %v1370_v25 }
  0x6a   : > { %560 = vmatprep.mubr.bf16.mxu0 %v1453_v0  ;;  %680 = vmatprep.mubr.bf16.mxu1 %v1453_v0 }
  0x71   : > { %1174 = vmatmul.mubr.msk.bf16.gmra.mxu0 %vm348_vm1, %v1371_v26  ;;  %1186 = vmatmul.mubr.msk.bf16.gmra.mxu1 %vm348_vm1, %v1372_v27 }
  0x72   : > { %570 = vmatprep.mubr.bf16.mxu0 %v1453_v0  ;;  %690 = vmatprep.mubr.bf16.mxu1 %v1453_v0 }
  0x79   : > { %1175 = vmatmul.mubr.msk.bf16.gmra.mxu0 %vm348_vm1, %v1373_v28  ;;  %1187 = vmatmul.mubr.msk.bf16.gmra.mxu1 %vm348_vm1, %v1374_v29 }
  0xe1   : > { %v462_v30 = vpop.f32.mrf.mxu0  ;;  %v582_v31 = vpop.f32.mrf.mxu1 }
  0xe3   : > { %v464_v32 = vpop.f32.mrf.mxu0  ;;  %v584_v33 = vpop.f32.mrf.mxu1 }
  0xe4   : > { %v1240_v34 = vpack.c.bf16 %v464_v32, %v462_v30  ;;  %v1264_v35 = vpack.c.bf16 %v584_v33, %v582_v31 }
  0xe5   : > { %v466_v36 = vpop.f32.mrf.mxu0  ;;  %v586_v37 = vpop.f32.mrf.mxu1 }
  0xe6   : > { %989 = vst [vmem:[%s1655_s24] sm:$0xff] %v1240_v34  ;;  %1013 = vst [vmem:[%s1655_s24 + $0xc0] sm:$0xff] %v1264_v35 }
  0xe7   : > { %v468_v38 = vpop.f32.mrf.mxu0  ;;  %v588_v39 = vpop.f32.mrf.mxu1 }
  0xe8   : > { %v1241_v40 = vpack.c.bf16 %v468_v38, %v466_v36  ;;  %v1265_v41 = vpack.c.bf16 %v588_v39, %v586_v37 }
  0xe9   : > { %v472_v42 = vpop.f32.mrf.mxu0  ;;  %v592_v43 = vpop.f32.mrf.mxu1 }
  0xea   : > { %990 = vst [vmem:[%s1655_s24 + $0x8] sm:$0xff] %v1241_v40  ;;  %1014 = vst [vmem:[%s1655_s24 + $0xc8] sm:$0xff] %v1265_v41 }
  0xeb   : > { %v474_v44 = vpop.f32.mrf.mxu0  ;;  %v594_v45 = vpop.f32.mrf.mxu1 }
  0xec   : > { %v1242_v46 = vpack.c.bf16 %v474_v44, %v472_v42  ;;  %v1266_v47 = vpack.c.bf16 %v594_v45, %v592_v43 }
  0xed   : > { %v476_v48 = vpop.f32.mrf.mxu0  ;;  %v596_v49 = vpop.f32.mrf.mxu1 }
  0xee   : > { %991 = vst [vmem:[%s1655_s24 + $0x10] sm:$0xff] %v1242_v46  ;;  %1015 = vst [vmem:[%s1655_s24 + $0xd0] sm:$0xff] %v1266_v47 }
  0xef   : > { %v478_v50 = vpop.f32.mrf.mxu0  ;;  %v598_v51 = vpop.f32.mrf.mxu1 }
  0xf0   : > { %v1243_v52 = vpack.c.bf16 %v478_v50, %v476_v48  ;;  %v1267_v53 = vpack.c.bf16 %v598_v51, %v596_v49 }
  0xf1   : > { %v482_v54 = vpop.f32.mrf.mxu0  ;;  %v602_v55 = vpop.f32.mrf.mxu1 }
  0xf2   : > { %992 = vst [vmem:[%s1655_s24 + $0x18] sm:$0xff] %v1243_v52  ;;  %1016 = vst [vmem:[%s1655_s24 + $0xd8] sm:$0xff] %v1267_v53 }
  0xf3   : > { %v484_v56 = vpop.f32.mrf.mxu0  ;;  %v604_v57 = vpop.f32.mrf.mxu1 }
  0xf4   : > { %v1244_v58 = vpack.c.bf16 %v484_v56, %v482_v54  ;;  %v1268_v59 = vpack.c.bf16 %v604_v57, %v602_v55 }
  0xf5   : > { %v486_v60 = vpop.f32.mrf.mxu0  ;;  %v606_v61 = vpop.f32.mrf.mxu1 }
  0xf6   : > { %993 = vst [vmem:[%s1655_s24 + $0x20] sm:$0xff] %v1244_v58  ;;  %1017 = vst [vmem:[%s1655_s24 + $0xe0] sm:$0xff] %v1268_v59 }
  0xf7   : > { %v488_v62 = vpop.f32.mrf.mxu0  ;;  %v608_v63 = vpop.f32.mrf.mxu1 }
  0xf8   : > { %v1245_v0 = vpack.c.bf16 %v488_v62, %v486_v60  ;;  %v1269_v1 = vpack.c.bf16 %v608_v63, %v606_v61 }
  0xf9   : > { %v492_v2 = vpop.f32.mrf.mxu0  ;;  %v612_v3 = vpop.f32.mrf.mxu1 }
  0xfa   : > { %994 = vst [vmem:[%s1655_s24 + $0x28] sm:$0xff] %v1245_v0  ;;  %1018 = vst [vmem:[%s1655_s24 + $0xe8] sm:$0xff] %v1269_v1 }
  0xfb   : > { %v494_v4 = vpop.f32.mrf.mxu0  ;;  %v614_v5 = vpop.f32.mrf.mxu1 }
  0xfc   : > { %v1246_v6 = vpack.c.bf16 %v494_v4, %v492_v2  ;;  %v1270_v7 = vpack.c.bf16 %v614_v5, %v612_v3 }
  0xfd   : > { %v496_v8 = vpop.f32.mrf.mxu0  ;;  %v616_v9 = vpop.f32.mrf.mxu1 }
  0xfe   : > { %995 = vst [vmem:[%s1655_s24 + $0x30] sm:$0xff] %v1246_v6  ;;  %1019 = vst [vmem:[%s1655_s24 + $0xf0] sm:$0xff] %v1270_v7 }
  0xff   : > { %v498_v10 = vpop.f32.mrf.mxu0  ;;  %v618_v11 = vpop.f32.mrf.mxu1 }
 0x100   : > { %v1247_v12 = vpack.c.bf16 %v498_v10, %v496_v8  ;;  %v1271_v13 = vpack.c.bf16 %v618_v11, %v616_v9 }
 0x101   : > { %v502_v14 = vpop.f32.mrf.mxu0  ;;  %v622_v15 = vpop.f32.mrf.mxu1 }
 0x102   : > { %996 = vst [vmem:[%s1655_s24 + $0x38] sm:$0xff] %v1247_v12  ;;  %1020 = vst [vmem:[%s1655_s24 + $0xf8] sm:$0xff] %v1271_v13 }
 0x103   : > { %v504_v16 = vpop.f32.mrf.mxu0  ;;  %v624_v17 = vpop.f32.mrf.mxu1 }
 0x104   : > { %v1248_v18 = vpack.c.bf16 %v504_v16, %v502_v14  ;;  %v1272_v19 = vpack.c.bf16 %v624_v17, %v622_v15 }
 0x105   : > { %v506_v20 = vpop.f32.mrf.mxu0  ;;  %v626_v21 = vpop.f32.mrf.mxu1 }
 0x106   : > { %997 = vst [vmem:[%s1655_s24 + $0x40] sm:$0xff] %v1248_v18  ;;  %1021 = vst [vmem:[%s1655_s24 + $0x100] sm:$0xff] %v1272_v19 }
 0x107   : > { %v508_v22 = vpop.f32.mrf.mxu0  ;;  %v628_v23 = vpop.f32.mrf.mxu1 }
 0x108   : > { %v1249_v24 = vpack.c.bf16 %v508_v22, %v506_v20  ;;  %v1273_v25 = vpack.c.bf16 %v628_v23, %v626_v21 }
 0x109   : > { %v512_v26 = vpop.f32.mrf.mxu0  ;;  %v632_v27 = vpop.f32.mrf.mxu1 }
 0x10a   : > { %998 = vst [vmem:[%s1655_s24 + $0x48] sm:$0xff] %v1249_v24  ;;  %1022 = vst [vmem:[%s1655_s24 + $0x108] sm:$0xff] %v1273_v25 }
 0x10b   : > { %v514_v28 = vpop.f32.mrf.mxu0  ;;  %v634_v29 = vpop.f32.mrf.mxu1 }
 0x10c   : > { %v1250_v30 = vpack.c.bf16 %v514_v28, %v512_v26  ;;  %v1274_v31 = vpack.c.bf16 %v634_v29, %v632_v27 }
 0x10d   : > { %v516_v32 = vpop.f32.mrf.mxu0  ;;  %v636_v33 = vpop.f32.mrf.mxu1 }
 0x10e   : > { %999 = vst [vmem:[%s1655_s24 + $0x50] sm:$0xff] %v1250_v30  ;;  %1023 = vst [vmem:[%s1655_s24 + $0x110] sm:$0xff] %v1274_v31 }
 0x10f   : > { %v518_v34 = vpop.f32.mrf.mxu0  ;;  %v638_v35 = vpop.f32.mrf.mxu1 }
 0x110   : > { %v1251_v36 = vpack.c.bf16 %v518_v34, %v516_v32  ;;  %v1275_v37 = vpack.c.bf16 %v638_v35, %v636_v33 }
 0x111   : > { %v522_v38 = vpop.f32.mrf.mxu0  ;;  %v642_v39 = vpop.f32.mrf.mxu1 }
 0x112   : > { %1000 = vst [vmem:[%s1655_s24 + $0x58] sm:$0xff] %v1251_v36  ;;  %1024 = vst [vmem:[%s1655_s24 + $0x118] sm:$0xff] %v1275_v37 }
 0x113   : > { %v524_v40 = vpop.f32.mrf.mxu0  ;;  %v644_v41 = vpop.f32.mrf.mxu1 }
 0x114   : > { %v1252_v42 = vpack.c.bf16 %v524_v40, %v522_v38  ;;  %v1276_v43 = vpack.c.bf16 %v644_v41, %v642_v39 }
 0x115   : > { %v526_v44 = vpop.f32.mrf.mxu0  ;;  %v646_v45 = vpop.f32.mrf.mxu1 }
 0x116   : > { %1001 = vst [vmem:[%s1655_s24 + $0x60] sm:$0xff] %v1252_v42  ;;  %1025 = vst [vmem:[%s1655_s24 + $0x120] sm:$0xff] %v1276_v43 }
 0x117   : > { %v528_v46 = vpop.f32.mrf.mxu0  ;;  %v648_v47 = vpop.f32.mrf.mxu1 }
 0x118   : > { %v1253_v48 = vpack.c.bf16 %v528_v46, %v526_v44  ;;  %v1277_v49 = vpack.c.bf16 %v648_v47, %v646_v45 }
 0x119   : > { %v532_v50 = vpop.f32.mrf.mxu0  ;;  %v652_v51 = vpop.f32.mrf.mxu1 }
 0x11a   : > { %1002 = vst [vmem:[%s1655_s24 + $0x68] sm:$0xff] %v1253_v48  ;;  %1026 = vst [vmem:[%s1655_s24 + $0x128] sm:$0xff] %v1277_v49 }
 0x11b   : > { %v534_v52 = vpop.f32.mrf.mxu0  ;;  %v654_v53 = vpop.f32.mrf.mxu1 }
 0x11c   : > { %v1254_v54 = vpack.c.bf16 %v534_v52, %v532_v50  ;;  %v1278_v55 = vpack.c.bf16 %v654_v53, %v652_v51 }
 0x11d   : > { %v536_v56 = vpop.f32.mrf.mxu0  ;;  %v656_v57 = vpop.f32.mrf.mxu1 }
 0x11e   : > { %1003 = vst [vmem:[%s1655_s24 + $0x70] sm:$0xff] %v1254_v54  ;;  %1027 = vst [vmem:[%s1655_s24 + $0x130] sm:$0xff] %v1278_v55 }
 0x11f   : > { %v538_v58 = vpop.f32.mrf.mxu0  ;;  %v658_v59 = vpop.f32.mrf.mxu1 }
 0x120   : > { %v1255_v60 = vpack.c.bf16 %v538_v58, %v536_v56  ;;  %v1279_v61 = vpack.c.bf16 %v658_v59, %v656_v57 }
 0x121   : > { %v542_v62 = vpop.f32.mrf.mxu0  ;;  %v662_v63 = vpop.f32.mrf.mxu1 }
 0x122   : > { %1004 = vst [vmem:[%s1655_s24 + $0x78] sm:$0xff] %v1255_v60  ;;  %1028 = vst [vmem:[%s1655_s24 + $0x138] sm:$0xff] %v1279_v61 }
 0x123   : > { %v544_v0 = vpop.f32.mrf.mxu0  ;;  %v664_v1 = vpop.f32.mrf.mxu1 }
 0x124   : > { %v1256_v2 = vpack.c.bf16 %v544_v0, %v542_v62  ;;  %v1280_v3 = vpack.c.bf16 %v664_v1, %v662_v63 }
 0x125   : > { %v546_v4 = vpop.f32.mrf.mxu0  ;;  %v666_v5 = vpop.f32.mrf.mxu1 }
 0x126   : > { %1005 = vst [vmem:[%s1655_s24 + $0x80] sm:$0xff] %v1256_v2  ;;  %1029 = vst [vmem:[%s1655_s24 + $0x140] sm:$0xff] %v1280_v3 }
 0x127   : > { %v548_v6 = vpop.f32.mrf.mxu0  ;;  %v668_v7 = vpop.f32.mrf.mxu1 }
 0x128   : > { %v1257_v8 = vpack.c.bf16 %v548_v6, %v546_v4  ;;  %v1281_v9 = vpack.c.bf16 %v668_v7, %v666_v5 }
 0x129   : > { %v552_v10 = vpop.f32.mrf.mxu0  ;;  %v672_v11 = vpop.f32.mrf.mxu1 }
 0x12a   : > { %1006 = vst [vmem:[%s1655_s24 + $0x88] sm:$0xff] %v1257_v8  ;;  %1030 = vst [vmem:[%s1655_s24 + $0x148] sm:$0xff] %v1281_v9 }
 0x12b   : > { %v554_v12 = vpop.f32.mrf.mxu0  ;;  %v674_v13 = vpop.f32.mrf.mxu1 }
 0x12c   : > { %v1258_v14 = vpack.c.bf16 %v554_v12, %v552_v10  ;;  %v1282_v15 = vpack.c.bf16 %v674_v13, %v672_v11 }
 0x12d   : > { %v556_v16 = vpop.f32.mrf.mxu0  ;;  %v676_v17 = vpop.f32.mrf.mxu1 }
 0x12e   : > { %1007 = vst [vmem:[%s1655_s24 + $0x90] sm:$0xff] %v1258_v14  ;;  %1031 = vst [vmem:[%s1655_s24 + $0x150] sm:$0xff] %v1282_v15 }
 0x12f   : > { %v558_v18 = vpop.f32.mrf.mxu0  ;;  %v678_v19 = vpop.f32.mrf.mxu1 }
 0x130   : > { %v1259_v20 = vpack.c.bf16 %v558_v18, %v556_v16  ;;  %v1283_v21 = vpack.c.bf16 %v678_v19, %v676_v17 }
 0x131   : > { %v562_v22 = vpop.f32.mrf.mxu0  ;;  %v682_v23 = vpop.f32.mrf.mxu1 }
 0x132   : > { %1008 = vst [vmem:[%s1655_s24 + $0x98] sm:$0xff] %v1259_v20  ;;  %1032 = vst [vmem:[%s1655_s24 + $0x158] sm:$0xff] %v1283_v21 }
 0x133   : > { %v564_v24 = vpop.f32.mrf.mxu0  ;;  %v684_v25 = vpop.f32.mrf.mxu1 }
 0x134   : > { %v1260_v26 = vpack.c.bf16 %v564_v24, %v562_v22  ;;  %v1284_v27 = vpack.c.bf16 %v684_v25, %v682_v23 }
 0x135   : > { %v566_v28 = vpop.f32.mrf.mxu0  ;;  %v686_v29 = vpop.f32.mrf.mxu1 }
 0x136   : > { %1009 = vst [vmem:[%s1655_s24 + $0xa0] sm:$0xff] %v1260_v26  ;;  %1033 = vst [vmem:[%s1655_s24 + $0x160] sm:$0xff] %v1284_v27 }
 0x137   : > { %v568_v30 = vpop.f32.mrf.mxu0  ;;  %v688_v31 = vpop.f32.mrf.mxu1 }
 0x138   : > { %v1261_v32 = vpack.c.bf16 %v568_v30, %v566_v28  ;;  %v1285_v33 = vpack.c.bf16 %v688_v31, %v686_v29 }
 0x139   : > { %v572_v34 = vpop.f32.mrf.mxu0  ;;  %v692_v35 = vpop.f32.mrf.mxu1 }
 0x13a   : > { %1010 = vst [vmem:[%s1655_s24 + $0xa8] sm:$0xff] %v1261_v32  ;;  %1034 = vst [vmem:[%s1655_s24 + $0x168] sm:$0xff] %v1285_v33 }
 0x13b   : > { %v574_v36 = vpop.f32.mrf.mxu0  ;;  %v694_v37 = vpop.f32.mrf.mxu1 }
 0x13c   : > { %v1262_v38 = vpack.c.bf16 %v574_v36, %v572_v34  ;;  %v1286_v39 = vpack.c.bf16 %v694_v37, %v692_v35 }
 0x13d   : > { %v576_v40 = vpop.f32.mrf.mxu0  ;;  %v696_v41 = vpop.f32.mrf.mxu1 }
 0x13e   : > { %1011 = vst [vmem:[%s1655_s24 + $0xb0] sm:$0xff] %v1262_v38  ;;  %1035 = vst [vmem:[%s1655_s24 + $0x170] sm:$0xff] %v1286_v39 }
 0x13f   : > { %v578_v42 = vpop.f32.mrf.mxu0  ;;  %v698_v43 = vpop.f32.mrf.mxu1 }
 0x140   : > { %v1263_v44 = vpack.c.bf16 %v578_v42, %v576_v40  ;;  %v1287_v45 = vpack.c.bf16 %v698_v43, %v696_v41 }
 0x142   : > { %1012 = vst [vmem:[%s1655_s24 + $0xb8] sm:$0xff] %v1263_v44  ;;  %1036 = vst [vmem:[%s1655_s24 + $0x178] sm:$0xff] %v1287_v45 }
 0x143   : > { %1388 = shalt.err (!%p1385_p5)
}
 0x144   : > { %s1389_s6 = scalar_lea.hbm %s1708_s29, 6144  ;;  %s1393_s15 = scalar_lea.hbm %s1763_s2, 12288 }
 0x145   : > { %p1390_p6 = scmp.ne.s32.totalorder %s1708_s29, %s1389_s6  ;;  %p1394_p10 = scmp.lt.s32.totalorder %s1708_s29, %s1763_s2 }
 0x146   : > { %p1395_p11 = scmp.lt.s32.totalorder %s1393_s15, %s1389_s6 }
 0x147   : > { %p1391_p7 = pnand %p1390_p6, %p1512_p4 }
 0x148   : > { %p1396_p12 = por %p1395_p11, %p1394_p10 }
 0x149   : > { %p1392_p9 = pneg %p1391_p7 }
 0x14b   : > { %p1397_p13 = pnand %p1396_p12, %p1392_p9 }
 0x14d   : > { %1400 = shalt.err (!%p1397_p13)
}
 0x14e   : > { %s1455_s20 = smov 128   ;;  %s1456_s23 = smov 8  }
 0x14f   : > { %1292 = dma.vmem_to_hbm [thread:$0]  (%p1512_p4), %s1710_s26, 6144, %s1708_s29, %s1716_s12, %s1455_s20, %s1455_s20, %s1456_s23  }
 0x150 PF: > { %p1298_p0 = scmp.ge.s32.totalorder %s1451_s14, 2  ;;  %s1068_s24 = sand.u32 1, %s1431_s9  }
 0x151   : > { %s1069_s25 = scalar_lea.sflag [#allocation3], %s1068_s24 }
 0x152   : > { %p1295_p1 = pnand %p1298_p0, %p1519_p8 }
 0x154   : > { %p1296_p2 = pneg %p1295_p1 }
 0x156   : > { %1426 = dma.done.wait (%p1296_p2), %s1069_s25, 6144  }
 0x157   : > { %1428 = vsyncadd (%p1296_p2), %s1069_s25, 4294961152  ;;  %s15_s14 = sadd.s32 1, %s1451_s14   ;;  %s1766_s9 = smov %s1435_s10 }
 0x158   : > { %p12_p3 = scmp.ge.s32.totalorder %s15_s14, 4   ;;  %s1767_s10 = smov %s1439_s11 }
 0x159   : > { %s1768_s11 = smov %s1525_s22  ;;  %s1769_s12 = smov %s1447_s13 }
 0x15a   : > { %s1770_s13 = smov %s1772_s17  ;;  %14 = sbr.rel (!%p12_p3) target bundleno = 4 (0x4), region = 63 }
 0x15f   :  { %1074 = vsyncpa [#allocation3], 1 }
 0x160   :  { %1076 = vsyncpa [#allocation3 + $0x1], 1 }

</bundles_post_ra>
